<compile_context>
chip_gen: v6e
topology: v6e:2x2x1
jax: 0.10.0
libtpu: 0.0.40
codegen_flags: <defaults>
</compile_context>

<pallas_src>
import numpy as np
import jax
import jax.numpy as jnp
from jax.experimental import pallas as pl
from jax.experimental.pallas import tpu as pltpu


# --------------------------------------------------------------------------- #
# Kernel
# --------------------------------------------------------------------------- #
def _mcc_attn_kernel(x_ref, wqkv_ref, wproj_ref, bproj_ref, bias_ref, o_ref):
    f32 = jnp.float32
    M, C = x_ref.shape                   # M = Bt * N rows of this batch tile
    N = bias_ref.shape[0]
    H, hd, _ = wproj_ref.shape
    Bt = M // N
    G = H * Bt                            # fused (head, batch) attention batch
    cdt = wqkv_ref.dtype                  # MXU compute dtype (bf16)

    # ---- fused, lane-dense QKV projection: (M, C) @ (C, 3C), f32 accum ------
    qkv = jnp.dot(x_ref[...], wqkv_ref[...], preferred_element_type=f32)

    # ---- one-time head-major relayout:  (M, C) -> (H*Bt, N, hd) --------------
    # Column order of qkv is [q h0..h{H-1} | k h0.. | v h0..], hd-minor.
    def split_heads(col0):
        hs = [qkv[:, col0 + h * hd: col0 + (h + 1) * hd].astype(cdt)
              for h in range(H)]                       # H x (M, hd)
        th = jnp.stack(hs, axis=0)                     # (H, Bt*N, hd)
        return th.reshape(G, N, hd)                    # g = h*Bt + b

    q = split_heads(0)          # scale pre-folded into the q weight columns
    k = split_heads(C)
    v = split_heads(2 * C)

    # ---- block-diagonal attention: batch & head are true batch dims ---------
    s = jnp.einsum('gqd,gkd->gqk', q, k, preferred_element_type=f32)  # (G,N,N)
    s = s + bias_ref[...][None]            # (N, N) finite -1e30 mask, no inf
    m = jnp.max(s, axis=-1, keepdims=True)
    p = jnp.exp(s - m)                     # masked entries underflow to 0.0
    l = jnp.sum(p, axis=-1, keepdims=True)  # > 0: diagonal is never masked
    # attn_drop: identity in eval mode.
    o = jnp.einsum('gqk,gkd->gqd', p.astype(cdt), v,
                   preferred_element_type=f32)          # (G, N, hd), unnorm.
    # Normalize the (N, hd) head outputs instead of the (N, N) probabilities.
    o = o * pl.reciprocal(l, approx=True)

    # ---- output projection fused with the head sum --------------------------
    # out = sum_h o_h @ W_proj[h] + b : H partial (M, hd) @ (hd, C) matmuls
    # accumulate into one (M, C) f32 value (no (H, M, C) temporary).
    oh = o.astype(cdt).reshape(H, M, hd)                # leading-dim regroup
    acc = jnp.dot(oh[0], wproj_ref[0], preferred_element_type=f32)
    for h in range(1, H):
        acc = acc + jnp.dot(oh[h], wproj_ref[h], preferred_element_type=f32)
    out = acc + bproj_ref[...]                          # (M, C) + (1, C)
    # proj_drop: identity in eval mode.
    o_ref[...] = out.astype(o_ref.dtype)                # single slab store


# --------------------------------------------------------------------------- #
# Wrapper
# --------------------------------------------------------------------------- #
def _vmem_capacity_bytes():
    try:
        return int(pltpu.get_tpu_info().vmem_capacity_bytes)
    except Exception:
        return 64 * 1024 * 1024            # conservative (v7x per-core VMEM)


def _tile_vmem_bytes(bt, N, C, H):
    """Rough per-grid-step live VMEM estimate (dominant terms)."""
    M = bt * N
    G = H * bt
    hd = C // H
    b = 0
    b += M * 3 * C * 4                      # qkv (f32)
    b += 3 * G * N * hd * 2                 # q, k, v (bf16)
    b += 2 * G * N * N * 4                  # s and p live together (f32)
    b += G * N * hd * 4                     # attention output o (f32)
    b += M * C * 4                          # proj accumulator (f32)
    b += 2 * M * C * 2 + 2 * M * C * 4      # x (bf16) / out (f32) double-buffers
    b += C * 3 * C * 2 + C * C * 2 + N * N * 4 + C * 4   # weights/mask (single)
    return b


def _pick_batch_tile(B, N, C, H, budget_bytes):
    """Largest divisor of B that fits the VMEM budget with a grid of >= 2
    (preferably even) steps, so both TensorCores get work and DMAs pipeline."""
    fits = []
    for bt in range(1, B + 1):
        if B % bt:
            continue
        grid = B // bt
        if B >= 2 and grid < 2:
            continue
        if _tile_vmem_bytes(bt, N, C, H) <= budget_bytes:
            fits.append(bt)
    if not fits:
        return 1
    even = [bt for bt in fits if (B // bt) % 2 == 0]
    return max(even) if even else max(fits)


def mcc_decoder_attention(x, w_qkv, w_proj, b_proj, unseen_size, *,
                          num_heads, batch_tile=None,
                          compute_dtype=jnp.bfloat16,
                          vmem_limit_bytes=None):
    """x: (B, N, C) f32; w_qkv: (C, 3C); w_proj: (C, C); b_proj: (C,).

    Weights are stored (in_features, out_features), i.e. y = x @ W (+ b),
    with nn.Linear's qkv column order [q | k | v], head-major within each.
    """
    B, N, C = x.shape
    H = num_heads
    assert C % H == 0, "dim must be divisible by num_heads"
    hd = C // H
    scale = float(hd) ** (-0.5)
    assert N % 8 == 0, "sequence length must be a multiple of 8 (sublane tile)"

    vmem_cap = _vmem_capacity_bytes()
    if vmem_limit_bytes is None:
        vmem_limit_bytes = int(vmem_cap * 0.75)          # 48 MiB on v7x, 96 on v5e/v6e
    if batch_tile is None:
        batch_tile = _pick_batch_tile(B, N, C, H, budget_bytes=int(vmem_cap * 0.4))
    Bt = batch_tile
    assert B % Bt == 0, "batch_tile must divide B"
    M = Bt * N

    # --- wrapper-side (plain XLA) prep ---------------------------------------
    # Fold the attention scale into the q columns; keep the weight 2-D so the
    # in-kernel QKV matmul output is lane-dense (width 3C, not 3*hd).
    w_qkv2 = w_qkv.astype(jnp.float32).at[:, :C].multiply(scale)
    w_qkv2 = w_qkv2.astype(compute_dtype)                      # (C, 3C)
    # Proj weight split per head along its input dim: out = sum_h o_h @ Wp[h].
    w_proj_h = w_proj.reshape(H, hd, C).astype(compute_dtype)  # (H, hd, C)
    b_proj2 = b_proj.reshape(1, C).astype(jnp.float32)

    # (N, N) additive mask, built once outside the kernel (no // or % inside):
    # key column j in the last `unseen_size` positions is masked for every
    # query i except i == j (diagonal).  Finite -1e30 keeps exp/softmax NaN-free.
    row = jnp.arange(N, dtype=jnp.int32)[:, None]
    col = jnp.arange(N, dtype=jnp.int32)[None, :]
    masked = jnp.logical_and(col >= N - unseen_size, row != col)
    bias = jnp.where(masked, -1e30, 0.0).astype(jnp.float32)   # (N, N)

    x2d = x.reshape(B * N, C).astype(compute_dtype)

    const = dict(pipeline_mode=pl.Buffered(1))   # constant-index inputs: 1 buffer

    grid_spec = pltpu.PrefetchScalarGridSpec(
        num_scalar_prefetch=0,
        grid=(B // Bt,),
        in_specs=[
            pl.BlockSpec((M, C), lambda b: (b, 0)),                  # x rows
            pl.BlockSpec((C, 3 * C), lambda b: (0, 0), **const),     # qkv weight
            pl.BlockSpec((H, hd, C), lambda b: (0, 0, 0), **const),  # proj weight
            pl.BlockSpec((1, C), lambda b: (0, 0), **const),         # proj bias
            pl.BlockSpec((N, N), lambda b: (0, 0), **const),         # mask bias
        ],
        out_specs=pl.BlockSpec((M, C), lambda b: (b, 0)),
    )

    # Output kept f32 to match the PyTorch module; emit bf16 here if the
    # consumer accepts it (halves HBM writeback).  At production sizes pad C
    # to a multiple of 128 for unmasked lane-dense stores.
    out2d = pl.pallas_call(
        _mcc_attn_kernel,
        out_shape=jax.ShapeDtypeStruct((B * N, C), jnp.float32),
        grid_spec=grid_spec,
        compiler_params=pltpu.CompilerParams(
            dimension_semantics=("parallel",),
            vmem_limit_bytes=vmem_limit_bytes),
    )(x2d, w_qkv2, w_proj_h, b_proj2, bias)

    return out2d.reshape(B, N, C)


# --------------------------------------------------------------------------- #
# Pure-JAX reference (mirror of the PyTorch forward, eval mode)
# --------------------------------------------------------------------------- #
def reference(x, w_qkv, w_proj, b_proj, unseen_size, *, num_heads):
    B, N, C = x.shape
    hd = C // num_heads
    scale = float(hd) ** (-0.5)

    qkv = x @ w_qkv                                                # (B, N, 3C)
    qkv = qkv.reshape(B, N, 3, num_heads, hd).transpose(2, 0, 3, 1, 4)
    q, k, v = qkv[0], qkv[1], qkv[2]                               # (B, H, N, hd)

    attn = jnp.einsum("bhnd,bhmd->bhnm", q, k) * scale             # (B, H, N, N)

    mask = jnp.zeros((N, N), dtype=jnp.float32)
    mask = mask.at[:, N - unseen_size:].set(-jnp.inf)
    diag = jnp.arange(N - unseen_size, N)
    mask = mask.at[diag, diag].set(0.0)
    attn = attn + mask[None, None]

    attn = jax.nn.softmax(attn, axis=-1)
    out = jnp.einsum("bhnm,bhmd->bhnd", attn, v)                   # (B, H, N, hd)
    out = out.transpose(0, 2, 1, 3).reshape(B, N, C)
    return out @ w_proj + b_proj


if __name__ == "__main__":
    # Small, module-consistent shapes.
    B, N, C = 2, 16, 32
    num_heads = 4
    unseen_size = 5

    key = jax.random.PRNGKey(0)
    kx, kqkv, kproj, kb = jax.random.split(key, 4)

    x = jax.random.normal(kx, (B, N, C), dtype=jnp.float32)
    w_qkv = jax.random.normal(kqkv, (C, 3 * C), dtype=jnp.float32) * 0.05
    w_proj = jax.random.normal(kproj, (C, C), dtype=jnp.float32) * 0.05
    b_proj = jax.random.normal(kb, (C,), dtype=jnp.float32) * 0.05

    out = mcc_decoder_attention(x, w_qkv, w_proj, b_proj, unseen_size,
                                num_heads=num_heads)
    out = jax.block_until_ready(out)

    ref = reference(x, w_qkv, w_proj, b_proj, unseen_size, num_heads=num_heads)
    # bf16 MXU operands (f32 accumulation) + approx reciprocal -> loose-ish tol.
    np.testing.assert_allclose(np.asarray(out), np.asarray(ref),
                               rtol=2e-2, atol=2e-2)

    print("KERNEL_OK")
</pallas_src>

<mosaic_0001>
module attributes {stable_mosaic.version = 11 : i64} {
  func.func @_mcc_attn_kernel(%arg0: i32, %arg1: memref<16x32xbf16, #tpu.memory_space<vmem>>, %arg2: memref<32x96xbf16, #tpu.memory_space<vmem>>, %arg3: memref<4x8x32xbf16, #tpu.memory_space<vmem>>, %arg4: memref<1x32xf32, #tpu.memory_space<vmem>>, %arg5: memref<16x16xf32, #tpu.memory_space<vmem>>, %arg6: memref<16x32xf32, #tpu.memory_space<vmem>>) attributes {dimension_semantics = [#tpu.dimension_semantics<parallel>], iteration_bounds = array<i64: 2>, scalar_prefetch = 0 : i64, scratch_operands = 0 : i64, tpu.core_type = #tpu.core_type<tc>, window_params = [{transform_indices = @transform_0, window_bounds = array<i64: 16, 32>}, {pipeline_mode = #tpu.pipeline_mode<synchronous>, transform_indices = @transform_1, window_bounds = array<i64: 32, 96>}, {pipeline_mode = #tpu.pipeline_mode<synchronous>, transform_indices = @transform_2, window_bounds = array<i64: 4, 8, 32>}, {pipeline_mode = #tpu.pipeline_mode<synchronous>, transform_indices = @transform_3, window_bounds = array<i64: 1, 32>}, {pipeline_mode = #tpu.pipeline_mode<synchronous>, transform_indices = @transform_4, window_bounds = array<i64: 16, 16>}, {transform_indices = @transform_5, window_bounds = array<i64: 16, 32>}]} {
    %c0 = arith.constant 0 : index
    %c0_0 = arith.constant 0 : index
    %0 = vector.load %arg1[%c0, %c0_0] : memref<16x32xbf16, #tpu.memory_space<vmem>>, vector<16x32xbf16>
    %c0_1 = arith.constant 0 : index
    %c0_2 = arith.constant 0 : index
    %1 = vector.load %arg2[%c0_1, %c0_2] : memref<32x96xbf16, #tpu.memory_space<vmem>>, vector<32x96xbf16>
    %cst = arith.constant dense<0.000000e+00> : vector<16x96xf32>
    %2 = tpu.matmul %0, %1, %cst {dimension_numbers = #tpu.dot_dimension_numbers<[1], [0], [0], [1], [0, 0, 1, 1], [], []>} : vector<16x32xbf16>, vector<32x96xbf16>, vector<16x96xf32> -> vector<16x96xf32>
    %3 = vector.extract_strided_slice %2 {offsets = [0, 0], sizes = [16, 8], strides = [1, 1]} : vector<16x96xf32> to vector<16x8xf32>
    %4 = arith.truncf %3 : vector<16x8xf32> to vector<16x8xbf16>
    %5 = vector.extract_strided_slice %2 {offsets = [0, 8], sizes = [16, 8], strides = [1, 1]} : vector<16x96xf32> to vector<16x8xf32>
    %6 = arith.truncf %5 : vector<16x8xf32> to vector<16x8xbf16>
    %7 = vector.extract_strided_slice %2 {offsets = [0, 16], sizes = [16, 8], strides = [1, 1]} : vector<16x96xf32> to vector<16x8xf32>
    %8 = arith.truncf %7 : vector<16x8xf32> to vector<16x8xbf16>
    %9 = vector.extract_strided_slice %2 {offsets = [0, 24], sizes = [16, 8], strides = [1, 1]} : vector<16x96xf32> to vector<16x8xf32>
    %10 = arith.truncf %9 : vector<16x8xf32> to vector<16x8xbf16>
    %11 = vector.shape_cast %4 : vector<16x8xbf16> to vector<1x16x8xbf16>
    %12 = vector.shape_cast %6 : vector<16x8xbf16> to vector<1x16x8xbf16>
    %13 = vector.shape_cast %8 : vector<16x8xbf16> to vector<1x16x8xbf16>
    %14 = vector.shape_cast %10 : vector<16x8xbf16> to vector<1x16x8xbf16>
    %15 = tpu.concatenate %11, %12, %13, %14 in 0 : vector<1x16x8xbf16>, vector<1x16x8xbf16>, vector<1x16x8xbf16>, vector<1x16x8xbf16> -> vector<4x16x8xbf16>
    %16 = vector.extract_strided_slice %2 {offsets = [0, 32], sizes = [16, 8], strides = [1, 1]} : vector<16x96xf32> to vector<16x8xf32>
    %17 = arith.truncf %16 : vector<16x8xf32> to vector<16x8xbf16>
    %18 = vector.extract_strided_slice %2 {offsets = [0, 40], sizes = [16, 8], strides = [1, 1]} : vector<16x96xf32> to vector<16x8xf32>
    %19 = arith.truncf %18 : vector<16x8xf32> to vector<16x8xbf16>
    %20 = vector.extract_strided_slice %2 {offsets = [0, 48], sizes = [16, 8], strides = [1, 1]} : vector<16x96xf32> to vector<16x8xf32>
    %21 = arith.truncf %20 : vector<16x8xf32> to vector<16x8xbf16>
    %22 = vector.extract_strided_slice %2 {offsets = [0, 56], sizes = [16, 8], strides = [1, 1]} : vector<16x96xf32> to vector<16x8xf32>
    %23 = arith.truncf %22 : vector<16x8xf32> to vector<16x8xbf16>
    %24 = vector.shape_cast %17 : vector<16x8xbf16> to vector<1x16x8xbf16>
    %25 = vector.shape_cast %19 : vector<16x8xbf16> to vector<1x16x8xbf16>
    %26 = vector.shape_cast %21 : vector<16x8xbf16> to vector<1x16x8xbf16>
    %27 = vector.shape_cast %23 : vector<16x8xbf16> to vector<1x16x8xbf16>
    %28 = tpu.concatenate %24, %25, %26, %27 in 0 : vector<1x16x8xbf16>, vector<1x16x8xbf16>, vector<1x16x8xbf16>, vector<1x16x8xbf16> -> vector<4x16x8xbf16>
    %29 = vector.extract_strided_slice %2 {offsets = [0, 64], sizes = [16, 8], strides = [1, 1]} : vector<16x96xf32> to vector<16x8xf32>
    %30 = arith.truncf %29 : vector<16x8xf32> to vector<16x8xbf16>
    %31 = vector.extract_strided_slice %2 {offsets = [0, 72], sizes = [16, 8], strides = [1, 1]} : vector<16x96xf32> to vector<16x8xf32>
    %32 = arith.truncf %31 : vector<16x8xf32> to vector<16x8xbf16>
    %33 = vector.extract_strided_slice %2 {offsets = [0, 80], sizes = [16, 8], strides = [1, 1]} : vector<16x96xf32> to vector<16x8xf32>
    %34 = arith.truncf %33 : vector<16x8xf32> to vector<16x8xbf16>
    %35 = vector.extract_strided_slice %2 {offsets = [0, 88], sizes = [16, 8], strides = [1, 1]} : vector<16x96xf32> to vector<16x8xf32>
    %36 = arith.truncf %35 : vector<16x8xf32> to vector<16x8xbf16>
    %37 = vector.shape_cast %30 : vector<16x8xbf16> to vector<1x16x8xbf16>
    %38 = vector.shape_cast %32 : vector<16x8xbf16> to vector<1x16x8xbf16>
    %39 = vector.shape_cast %34 : vector<16x8xbf16> to vector<1x16x8xbf16>
    %40 = vector.shape_cast %36 : vector<16x8xbf16> to vector<1x16x8xbf16>
    %41 = tpu.concatenate %37, %38, %39, %40 in 0 : vector<1x16x8xbf16>, vector<1x16x8xbf16>, vector<1x16x8xbf16>, vector<1x16x8xbf16> -> vector<4x16x8xbf16>
    "tpu.trace_start"() <{level = 10 : i32, message = "gqd,gkd->gqk"}> : () -> ()
    %cst_3 = arith.constant dense<0.000000e+00> : vector<4x16x16xf32>
    %42 = tpu.matmul %15, %28, %cst_3 {dimension_numbers = #tpu.dot_dimension_numbers<[2], [2], [1], [1], [0, 0, 0, 1, 1, 1], [0], [0]>} : vector<4x16x8xbf16>, vector<4x16x8xbf16>, vector<4x16x16xf32> -> vector<4x16x16xf32>
    "tpu.trace_stop"() : () -> ()
    %c0_4 = arith.constant 0 : index
    %c0_5 = arith.constant 0 : index
    %43 = vector.load %arg5[%c0_4, %c0_5] : memref<16x16xf32, #tpu.memory_space<vmem>>, vector<16x16xf32>
    %44 = vector.shape_cast %43 : vector<16x16xf32> to vector<1x16x16xf32>
    %45 = vector.broadcast %44 : vector<1x16x16xf32> to vector<4x16x16xf32>
    %46 = arith.addf %42, %45 : vector<4x16x16xf32>
    %cst_6 = arith.constant dense<0xFF800000> : vector<4x16xf32>
    %47 = vector.multi_reduction <maximumf>, %46, %cst_6 [2] : vector<4x16x16xf32> to vector<4x16xf32>
    %48 = vector.shape_cast %47 : vector<4x16xf32> to vector<4x16x1xf32>
    %49 = vector.broadcast %48 : vector<4x16x1xf32> to vector<4x16x16xf32>
    %50 = arith.subf %46, %49 : vector<4x16x16xf32>
    %51 = math.exp %50 : vector<4x16x16xf32>
    %cst_7 = arith.constant dense<0.000000e+00> : vector<4x16xf32>
    %52 = vector.multi_reduction <add>, %51, %cst_7 [2] : vector<4x16x16xf32> to vector<4x16xf32>
    %53 = vector.shape_cast %52 : vector<4x16xf32> to vector<4x16x1xf32>
    %54 = arith.truncf %51 : vector<4x16x16xf32> to vector<4x16x16xbf16>
    "tpu.trace_start"() <{level = 10 : i32, message = "gqk,gkd->gqd"}> : () -> ()
    %cst_8 = arith.constant dense<0.000000e+00> : vector<4x16x8xf32>
    %55 = tpu.matmul %54, %41, %cst_8 {dimension_numbers = #tpu.dot_dimension_numbers<[2], [1], [1], [2], [0, 0, 0, 1, 1, 2], [0], [0]>} : vector<4x16x16xbf16>, vector<4x16x8xbf16>, vector<4x16x8xf32> -> vector<4x16x8xf32>
    "tpu.trace_stop"() : () -> ()
    %56 = tpu.reciprocal %53 {approx = true} : vector<4x16x1xf32> -> vector<4x16x1xf32>
    %57 = vector.broadcast %56 : vector<4x16x1xf32> to vector<4x16x8xf32>
    %58 = arith.mulf %55, %57 : vector<4x16x8xf32>
    %59 = arith.truncf %58 : vector<4x16x8xf32> to vector<4x16x8xbf16>
    %60 = vector.extract_strided_slice %59 {offsets = [0, 0, 0], sizes = [1, 16, 8], strides = [1, 1, 1]} : vector<4x16x8xbf16> to vector<1x16x8xbf16>
    %61 = vector.shape_cast %60 : vector<1x16x8xbf16> to vector<16x8xbf16>
    %c0_9 = arith.constant 0 : index
    %c0_10 = arith.constant 0 : index
    %c0_11 = arith.constant 0 : index
    %62 = vector.load %arg3[%c0_9, %c0_10, %c0_11] : memref<4x8x32xbf16, #tpu.memory_space<vmem>>, vector<1x8x32xbf16>
    %63 = vector.shape_cast %62 : vector<1x8x32xbf16> to vector<8x32xbf16>
    %cst_12 = arith.constant dense<0.000000e+00> : vector<16x32xf32>
    %64 = tpu.matmul %61, %63, %cst_12 {dimension_numbers = #tpu.dot_dimension_numbers<[1], [0], [0], [1], [0, 0, 1, 1], [], []>} : vector<16x8xbf16>, vector<8x32xbf16>, vector<16x32xf32> -> vector<16x32xf32>
    %65 = vector.extract_strided_slice %59 {offsets = [1, 0, 0], sizes = [1, 16, 8], strides = [1, 1, 1]} : vector<4x16x8xbf16> to vector<1x16x8xbf16>
    %66 = vector.shape_cast %65 : vector<1x16x8xbf16> to vector<16x8xbf16>
    %c1 = arith.constant 1 : index
    %c0_13 = arith.constant 0 : index
    %c0_14 = arith.constant 0 : index
    %67 = vector.load %arg3[%c1, %c0_13, %c0_14] : memref<4x8x32xbf16, #tpu.memory_space<vmem>>, vector<1x8x32xbf16>
    %68 = vector.shape_cast %67 : vector<1x8x32xbf16> to vector<8x32xbf16>
    %cst_15 = arith.constant dense<0.000000e+00> : vector<16x32xf32>
    %69 = tpu.matmul %66, %68, %cst_15 {dimension_numbers = #tpu.dot_dimension_numbers<[1], [0], [0], [1], [0, 0, 1, 1], [], []>} : vector<16x8xbf16>, vector<8x32xbf16>, vector<16x32xf32> -> vector<16x32xf32>
    %70 = arith.addf %64, %69 : vector<16x32xf32>
    %71 = vector.extract_strided_slice %59 {offsets = [2, 0, 0], sizes = [1, 16, 8], strides = [1, 1, 1]} : vector<4x16x8xbf16> to vector<1x16x8xbf16>
    %72 = vector.shape_cast %71 : vector<1x16x8xbf16> to vector<16x8xbf16>
    %c2 = arith.constant 2 : index
    %c0_16 = arith.constant 0 : index
    %c0_17 = arith.constant 0 : index
    %73 = vector.load %arg3[%c2, %c0_16, %c0_17] : memref<4x8x32xbf16, #tpu.memory_space<vmem>>, vector<1x8x32xbf16>
    %74 = vector.shape_cast %73 : vector<1x8x32xbf16> to vector<8x32xbf16>
    %cst_18 = arith.constant dense<0.000000e+00> : vector<16x32xf32>
    %75 = tpu.matmul %72, %74, %cst_18 {dimension_numbers = #tpu.dot_dimension_numbers<[1], [0], [0], [1], [0, 0, 1, 1], [], []>} : vector<16x8xbf16>, vector<8x32xbf16>, vector<16x32xf32> -> vector<16x32xf32>
    %76 = arith.addf %70, %75 : vector<16x32xf32>
    %77 = vector.extract_strided_slice %59 {offsets = [3, 0, 0], sizes = [1, 16, 8], strides = [1, 1, 1]} : vector<4x16x8xbf16> to vector<1x16x8xbf16>
    %78 = vector.shape_cast %77 : vector<1x16x8xbf16> to vector<16x8xbf16>
    %c3 = arith.constant 3 : index
    %c0_19 = arith.constant 0 : index
    %c0_20 = arith.constant 0 : index
    %79 = vector.load %arg3[%c3, %c0_19, %c0_20] : memref<4x8x32xbf16, #tpu.memory_space<vmem>>, vector<1x8x32xbf16>
    %80 = vector.shape_cast %79 : vector<1x8x32xbf16> to vector<8x32xbf16>
    %cst_21 = arith.constant dense<0.000000e+00> : vector<16x32xf32>
    %81 = tpu.matmul %78, %80, %cst_21 {dimension_numbers = #tpu.dot_dimension_numbers<[1], [0], [0], [1], [0, 0, 1, 1], [], []>} : vector<16x8xbf16>, vector<8x32xbf16>, vector<16x32xf32> -> vector<16x32xf32>
    %82 = arith.addf %76, %81 : vector<16x32xf32>
    %c0_22 = arith.constant 0 : index
    %c0_23 = arith.constant 0 : index
    %83 = vector.load %arg4[%c0_22, %c0_23] : memref<1x32xf32, #tpu.memory_space<vmem>>, vector<1x32xf32>
    %84 = vector.broadcast %83 : vector<1x32xf32> to vector<16x32xf32>
    %85 = arith.addf %82, %84 : vector<16x32xf32>
    %c0_24 = arith.constant 0 : index
    %c0_25 = arith.constant 0 : index
    %86 = vector.load %arg6[%c0_24, %c0_25] : memref<16x32xf32, #tpu.memory_space<vmem>>, vector<16x32xf32>
    tpu.vector_store %arg6[%c0_24, %c0_25], %85 {strides = array<i32>} : memref<16x32xf32, #tpu.memory_space<vmem>>, vector<16x32xf32>,
    return
  }
  func.func @transform_0(%arg0: i32) -> (i32, i32) {
    %c0_i32 = arith.constant 0 : i32
    %c0_i32_0 = arith.constant 0 : i32
    return %arg0, %c0_i32 : i32, i32
  }
  func.func @transform_1(%arg0: i32) -> (i32, i32) {
    %c0_i32 = arith.constant 0 : i32
    %c0_i32_0 = arith.constant 0 : i32
    %c0_i32_1 = arith.constant 0 : i32
    return %c0_i32, %c0_i32_0 : i32, i32
  }
  func.func @transform_2(%arg0: i32) -> (i32, i32, i32) {
    %c0_i32 = arith.constant 0 : i32
    %c0_i32_0 = arith.constant 0 : i32
    %c0_i32_1 = arith.constant 0 : i32
    %c0_i32_2 = arith.constant 0 : i32
    return %c0_i32, %c0_i32_0, %c0_i32_1 : i32, i32, i32
  }
  func.func @transform_3(%arg0: i32) -> (i32, i32) {
    %c0_i32 = arith.constant 0 : i32
    %c0_i32_0 = arith.constant 0 : i32
    %c0_i32_1 = arith.constant 0 : i32
    return %c0_i32, %c0_i32_0 : i32, i32
  }
  func.func @transform_4(%arg0: i32) -> (i32, i32) {
    %c0_i32 = arith.constant 0 : i32
    %c0_i32_0 = arith.constant 0 : i32
    %c0_i32_1 = arith.constant 0 : i32
    return %c0_i32, %c0_i32_0 : i32, i32
  }
  func.func @transform_5(%arg0: i32) -> (i32, i32) {
    %c0_i32 = arith.constant 0 : i32
    %c0_i32_0 = arith.constant 0 : i32
    return %arg0, %c0_i32 : i32, i32
  }
}

</mosaic_0001>

<bundles_post_ra>
// kernel: tpu_custom_call.1
= control target key start
LH: loop header
LB: loop body
LE: loop exit
PB: predicated region body
PF: predicated region fallthrough
CT: control target
= control target key end

     0   :  { %10 = vsyncpa [#allocation3], 0  ;;  %s1982_s0 = inlined_call_operand.hbm [shape: bf16[32,32], index: 0, kind: input, shape index: {}]   ;;  %s1983_s1 = inlined_call_operand.hbm [shape: bf16[32,96], index: 1, kind: input, shape index: {}]   ;;  %s1984_s2 = inlined_call_operand.hbm [shape: bf16[4,8,32], index: 2, kind: input, shape index: {}]   ;;  %s1985_s3 = inlined_call_operand.vmem [shape: f32[1,32], index: 3, kind: input, shape index: {}]   ;;  %s1986_s4 = inlined_call_operand.hbm [shape: f32[16,16], index: 4, kind: input, shape index: {}]   ;;  %s1987_s5 = inlined_call_operand.hbm [shape: f32[32,32], index: 5, kind: output, shape index: {}]  }
   0x1   :  { %12 = vsyncpa [#allocation3 + $0x1], 0 }
   0x2   :  { %13 = vsyncpa [#allocation6], 0 }
   0x3   :  { %14 = vsyncpa [#allocation9], 0 }
   0x4   :  { %15 = vsyncpa [#allocation4], 0 }
   0x5   :  { %17 = vsyncpa [#allocation4 + $0x1], 0  ;;  %s1676_s18 = smov 0   ;;  %s1678_s19 = smov 0  }
   0x6   :  { %s1680_s20 = smov 0   ;;  %s1682_s21 = smov 0  }
   0x7 LB: > { %s1697_s22 = sadd.s32 4294967295, %s1626_s21   ;;  %s1177_s23 = sadd.s32 4294967294, %s1626_s21   ;;  %s1626_s21 = sphi %s1682_s21, %s2012_s21   ;;  %s1622_s20 = sphi %s1680_s20, %s2011_s20   ;;  %s1618_s19 = sphi %s1678_s19, %s2010_s19   ;;  %s1614_s18 = sphi %s1676_s18, %s2009_s18  }
   0x8   : > { %p43_p0 = scmp.ne.s32.totalorder %s1618_s19, %s1614_s18  ;;  %p1988_p1 = scmp.eq.s32.totalorder %s1697_s22, 0 }
   0x9   : > { %p151_p2 = scmp.eq.s32.totalorder %s1697_s22, 1  ;;  %p157_p3 = scmp.eq.s32.totalorder %s1177_s23, 1 }
   0xa   : > { %p1706_p4 = por %p1988_p1, %p43_p0  ;;  %p1178_p5 = scmp.ge.s32.totalorder %s1626_s21, 1 }
   0xb   : > { %p1711_p6 = por %p157_p3, %p43_p0  ;;  %p164_p7 = scmp.lt.s32.totalorder %s1626_s21, 3 }
   0xc   : > { %s1993_s24 = scalar_select %p1706_p4, 1, 0 }
   0xd   : > { %s1994_s25 = scalar_select %p1711_p6, 1, 0 }
   0xe   : > { %p1716_p8 = pnand %p1178_p5, %p164_p7  ;;  %s1628_s27 = smov [#allocation5]  }
   0xf   : > { %s176_s28 = sshll.u32 %s1628_s27, 4  ;;  %s1629_s30 = smov [#allocation7]   ;;  %s177_s28 = int_to_ptr.vmem [resolvable:$true] %s176_s28 }
  0x10   : > { %s1995_s26 = scalar_select %p1716_p8, 1, 0 }
  0x11   : > { %p1339_p9 = pneg %p1716_p8  ;;  %s189_s6 = sshll.u32 %s1629_s30, 4  ;;  %s190_s6 = int_to_ptr.vmem [resolvable:$true] %s189_s6 }
  0x12   : > { %s1630_s7 = smov [#allocation8]   ;;  %s1459_s9 = scalar_lea.vmem %s177_s28, 256 }
  0x13   : > { %p1725_p11 = pnand %p1339_p9, %p1988_p1  ;;  %s205_s8 = sshll.u32 %s1630_s7, 4  ;;  %s206_s8 = int_to_ptr.vmem [resolvable:$true] %s205_s8 }
  0x14   : > { %p1460_p13 = scmp.ne.s32.totalorder %s177_s28, %s1459_s9  ;;  %p1467_p5 = scmp.lt.s32.totalorder %s177_s28, %s177_s28 }
  0x15   : > { %p1450_p12 = pneg %p1725_p11  ;;  %p1468_p7 = scmp.lt.s32.totalorder %s1459_s9, %s1459_s9 }
  0x17   : > { %p1462_p0 = pnand %p1460_p13, %p1450_p12  ;;  %p1469_p9 = por %p1468_p7, %p1467_p5 }
  0x19   : > { %p1463_p3 = pneg %p1462_p0 }
  0x1b   : > { %p1470_p10 = pnand %p1469_p9, %p1463_p3 }
  0x1d   : > { %1473 = shalt.err (!%p1470_p10)
}
  0x1e   : > { %s1989_s10 = smov 64   ;;  %s1632_s11 = smov 4  }
  0x1f   : > { %1342 = dma.hbm_to_vmem [thread:$0]  (!%p1725_p11), %s1983_s1, 256, %s177_s28, [#allocation6], %s1989_s10, %s1989_s10, %s1632_s11  }
  0x20   : > { %s1485_s14 = scalar_lea.vmem %s190_s6, 256  ;;  %p1493_p3 = scmp.lt.s32.totalorder %s190_s6, %s190_s6 }
  0x21   : > { %p1486_p13 = scmp.ne.s32.totalorder %s190_s6, %s1485_s14  ;;  %p1494_p10 = scmp.lt.s32.totalorder %s1485_s14, %s1485_s14 }
  0x23   : > { %p1488_p0 = pnand %p1486_p13, %p1450_p12  ;;  %p1495_p7 = por %p1494_p10, %p1493_p3 }
  0x25   : > { %p1489_p5 = pneg %p1488_p0 }
  0x27   : > { %p1496_p9 = pnand %p1495_p7, %p1489_p5 }
  0x29   : > { %1499 = shalt.err (!%p1496_p9)
}
  0x2a   : > { %1345 = dma.hbm_to_vmem [thread:$0]  (!%p1725_p11), %s1984_s2, 256, %s190_s6, [#allocation6], %s1989_s10, %s1989_s10, %s1632_s11  }
  0x2b   : > { %s1511_s17 = scalar_lea.vmem %s206_s8, 256  ;;  %p1519_p3 = scmp.lt.s32.totalorder %s206_s8, %s206_s8 }
  0x2c   : > { %p1512_p1 = scmp.ne.s32.totalorder %s206_s8, %s1511_s17  ;;  %p1520_p5 = scmp.lt.s32.totalorder %s1511_s17, %s1511_s17 }
  0x2e   : > { %p1514_p13 = pnand %p1512_p1, %p1450_p12  ;;  %p1521_p10 = por %p1520_p5, %p1519_p3 }
  0x30   : > { %p1515_p0 = pneg %p1514_p13 }
  0x32   : > { %p1522_p7 = pnand %p1521_p10, %p1515_p0 }
  0x34   : > { %1525 = shalt.err (!%p1522_p7)
}
  0x35   : > { %s1633_s23 = smov 128   ;;  %s1634_s27 = smov 8  }
  0x36   : > { %1348 = dma.hbm_to_vmem [thread:$0]  (!%p1725_p11), %s1986_s4, 256, %s206_s8, [#allocation9], %s1633_s23, %s1633_s23, %s1634_s27  }
  0x37   : > { %s1762_s6 = sadd.s32 1, %s1626_s21   ;;  %s30_s9 = sadd.s32 1, %s1622_s20 }
  0x38   : > { %s27_s7 = ssub.s32 %s1626_s21, %s1762_s6  ;;  %p37_p12 = scmp.ne.s32.totalorder %s1622_s20, %s1618_s19 }
  0x39   : > { %p28_p1 = scmp.eq.s32.totalorder %s27_s7, 0  ;;  %p38_p9 = scmp.eq.s32.totalorder %s1626_s21, 0 }
  0x3a   : > { %p1360_p13 = scmp.lt.s32.totalorder %s1626_s21, 2  ;;  %p1776_p3 = por %p151_p2, %p37_p12 }
  0x3b   : > { %s1772_s12 = scalar_select %p28_p1, %s1622_s20, %s30_s9  }
  0x3c   : > { %p39_p0 = por %p38_p9, %p37_p12  ;;  %s219_s29 = sand.u32 1, %s1622_s20  }
  0x3d   : > { %s1997_s13 = scalar_select %p1776_p3, 1, 0 }
  0x3e   : > { %s1214_s14 = sshll.u32 %s1626_s21, 7  ;;  %s1183_s8 = sshll.u32 %s219_s29, 3 }
  0x3f   : > { %s1785_s17 = scalar_lea.hbm %s1982_s0, %s1214_s14  ;;  %s223_s23 = scalar_lea.vmem [#allocation2], %s1183_s8 }
  0x40   : > { %s230_s27 = sshll.u32 %s223_s23, 4  ;;  %p1787_p11 = pnand %p1360_p13, %p39_p0  ;;  %s1791_s27 = int_to_ptr.vmem [resolvable:$true] %s230_s27 }
  0x41   : > { %s1793_s30 = scalar_lea.sflag [#allocation3], %s219_s29  ;;  %s1526_s7 = scalar_lea.hbm %s1785_s17, 128 }
  0x42   : > { %p1527_p2 = scmp.ne.s32.totalorder %s1785_s17, %s1526_s7  ;;  %p1528_p5 = pneg %p1787_p11 }
  0x43   : > { %s1531_s8 = scalar_lea.hbm %s1982_s0, 256  ;;  %p1532_p1 = scmp.lt.s32.totalorder %s1785_s17, %s1982_s0 }
  0x44   : > { %p1529_p10 = pnand %p1528_p5, %p1527_p2  ;;  %p1533_p12 = scmp.lt.s32.totalorder %s1531_s8, %s1526_s7 }
  0x46   : > { %p1530_p7 = pneg %p1529_p10  ;;  %p1534_p9 = por %p1533_p12, %p1532_p1 }
  0x48   : > { %p1535_p13 = pnand %p1534_p9, %p1530_p7 }
  0x4a   : > { %1538 = shalt.err (!%p1535_p13)
}
  0x4b   : > { %s1539_s29 = scalar_lea.vmem %s1791_s27, 128  ;;  %s1635_s23 = smov [#allocation2]  }
  0x4c   : > { %p1540_p0 = scmp.ne.s32.totalorder %s1791_s27, %s1539_s29  ;;  %s1544_s10 = sshll.u32 %s1635_s23, 4  ;;  %s1545_s10 = int_to_ptr.vmem [resolvable:$false] %s1544_s10 }
  0x4d   : > { %s1546_s9 = scalar_lea.vmem %s1545_s10, 256  ;;  %p1547_p10 = scmp.lt.s32.totalorder %s1791_s27, %s1545_s10 }
  0x4e   : > { %p1542_p6 = pnand %p1540_p0, %p1528_p5  ;;  %p1548_p3 = scmp.lt.s32.totalorder %s1546_s9, %s1539_s29 }
  0x50   : > { %p1543_p2 = pneg %p1542_p6  ;;  %p1549_p4 = por %p1548_p3, %p1547_p10 }
  0x52   : > { %p1550_p8 = pnand %p1549_p4, %p1543_p2 }
  0x54   : > { %1553 = shalt.err (!%p1550_p8)
}
  0x55   : > { %s1999_s7 = smov 64   ;;  %p2000_p6 = scmp.ne.s32.totalorder %s1995_s26, 0 }
  0x56   : > { %1352 = dma.hbm_to_vmem [thread:$0]  (!%p1787_p11), %s1785_s17, 128, %s1791_s27, %s1793_s30, %s1999_s7, %s1999_s7, %s1632_s11  }
  0x57   : > { %242 = sbr.rel (%p2000_p6) target bundleno = 1331 (0x533), region = 40  ;;  %s1820_s14 = sand.u32 (!%p2000_p6), 1, %s1618_s19  }
  0x58   : > { %s1187_s10 = sshll.u32 (!%p2000_p6), %s1820_s14, 3  ;;  %s245_s8 = scalar_lea.sflag (!%p2000_p6), [#allocation3], %s1820_s14 }
  0x59   : > { %s248_s15 = scalar_lea.vmem (!%p2000_p6), [#allocation2], %s1187_s10  ;;  %p2001_p4 = scmp.ne.s32.totalorder (!%p2000_p6), %s1993_s24, 0 }
  0x5c   : > { %1597 = dma.done.wait (%p2001_p4), %s245_s8, 128  }
  0x5d   : > { %1599 = vsyncadd (%p2001_p4), %s245_s8, 4294967168  ;;  %p2002_p8 = scmp.eq.s32.totalorder %s1697_s22, 0 }
  0x5f   : > { %1601 = dma.done.wait (%p2002_p8), [#allocation6], 512   ;;  %p2003_p3 = pmov %p2002_p8 }
  0x61   : > { %1603 = vsyncadd (%p2003_p3), [#allocation6], 4294966784  ;;  %p2004_p11 = pmov %p2003_p3 }
  0x62   : > { %p2005_p5 = pmov %p2003_p3 }
  0x63   : > { %1605 = dma.done.wait (%p2004_p11), [#allocation9], 256  }
  0x64   : > { %1607 = vsyncadd (%p2005_p5), [#allocation9], 4294967040  ;;  %v1636_v0 = vmov 0.0   ;;  %vm1637_vm0 = vmmov 0   ;;  %v1413_v1 = vld [vmem:[#allocation5 + $0x8] sm:$0xff]   ;;  %v1414_v2 = vld [vmem:[#allocation5] sm:$0xff]  }
  0x65   : > { %1243 = vmatprep.subr.bf16.mxu0 %v1636_v0  ;;  %1247 = vmatprep.mubr.msk.bf16.mxu0 %vm1637_vm0, %v1636_v0  ;;  %v1415_v3 = vld [vmem:[%s248_s15] sm:$0xff]   ;;  %vm313_vm1 = vcmask 261120   ;;  %s1638_s24 = smov 104   ;;  %s1639_s26 = smov 120   ;;  %vm370_vm2 = vcmask 64512   ;;  %v366_v22 = vld [vmem:[#allocation8] sm:$0xff] }
  0x66   : > { %1251 = vmatprep.subr.bf16.mxu1 %v1636_v0  ;;  %1253 = vmatprep.mubr.msk.bf16.mxu1 %vm1637_vm0, %v1636_v0  ;;  %s1640_s11 = smov 96   ;;  %s1641_s17 = smov 112   ;;  %vm565_vm3 = vcmask 130048   ;;  %v367_v26 = vld [vmem:[#allocation8 + $0x8] sm:$0xff]  ;;  %vm856_vm4 = vcmask 1043456  }
  0x67   : > { %1244 = vmatpush3.bf16.msra.mxu0 %v1413_v1  ;;  %s1642_s27 = smov 64   ;;  %s1191_s28 = sshll.u32 %s1820_s14, 4 }
  0x68   : > { %1245 = vmatprep.subr.bf16.mxu0 %v1636_v0  ;;  %s1215_s29 = sshll.u32 %s1697_s22, 8  ;;  %s286_s23 = scalar_lea.vmem [#allocation10], %s1191_s28 }
  0x69   : > { %s1075_s9 = sshll.u32 %s286_s23, 4  ;;  %s1936_s8 = scalar_lea.hbm %s1987_s5, %s1215_s29  ;;  %s1938_s9 = int_to_ptr.vmem [resolvable:$true] %s1075_s9 }
  0x6a   : > { %s1062_s22 = scalar_lea.sflag [#allocation4], %s1820_s14  ;;  %s1554_s15 = scalar_lea.vmem %s1938_s9, 256 }
  0x6b   : > { %1246 = vmatpush3.bf16.msra.mxu0 %v1414_v2  ;;  %p1555_p7 = scmp.ne.s32.totalorder %s1938_s9, %s1554_s15  ;;  %p2006_p1 = scmp.ne.s32.totalorder %s1997_s13, 0 }
  0x6c   : > { %1257 = vmatprep.subr.bf16.mxu0 %v1636_v0 }
  0x6d   : > { %p1556_p12 = pnand %p1555_p7, %p2006_p1 }
  0x6e   : > { %1248 = vmatmul.mubr.msk.bf16.vlgmr.msra.gmra.mxu0 %vm313_vm1, %v1415_v3 }
  0x6f   : > { %1259 = vmatprep.mubr.msk.bf16.mxu0 %vm1637_vm0, %v1636_v0  ;;  %p1557_p9 = pneg %p1556_p12 }
 0x12e   : > { %v351_v4 = vpop.f32.mrf.mxu0 }
 0x130   : > { %v1249_v5 = vpop.f32.mrf.mxu0 }
 0x132   : > { %v354_v6 = vpop.f32.mrf.mxu0 }
 0x133   : > { %v358_v7 = vpack.c.bf16 %v354_v6, %v351_v4 }
 0x134   : > { %v1250_v8 = vpop.f32.mrf.mxu0 }
 0x135   : > { %364 = vrot.lane.b32.xlu1 %v358_v7, %s1638_s24  ;;  %360 = vrot.lane.b32.xlu0 %v358_v7, %s1639_s26  ;;  %s1643_s24 = smov [#allocation10]  }
 0x136   : > { %s1558_s26 = sshll.u32 %s1643_s24, 4  ;;  %s1559_s26 = int_to_ptr.vmem [resolvable:$false] %s1558_s26 }
 0x137   : > { %p1561_p13 = scmp.lt.s32.totalorder %s1938_s9, %s1559_s26 }
 0x139   : > { %368 = vrot.lane.b32.xlu1 %v358_v7, %s1640_s11  ;;  %362 = vrot.lane.b32.xlu0 %v358_v7, %s1641_s17 }
 0x1a7   : > { %v1847_v9 = vpop.permute.xlu1 %364  ;;  %v361_v10 = vpop.permute.xlu0 %360 }
 0x1a8   : > { %418 = vrot.lane.b32.xlu0 %v361_v10, %s1640_s11 }
 0x1ab   : > { %v369_v11 = vpop.permute.xlu1 %368  ;;  %v1849_v12 = vpop.permute.xlu0 %362 }
 0x1ac   : > { %516 = vrot.lane.b32.xlu0 %v1847_v9, %s1640_s11  ;;  %467 = vrot.lane.b32.xlu1 %v1849_v12, %s1640_s11  ;;  %v375_v13 = vsel %vm370_vm2, %v369_v11, 0  ;;  %s1560_s11 = scalar_lea.vmem %s1559_s26, 512 }
 0x1ad   : > { %1252 = vmatpush3.bf16.xpose.msra.mxu1 %v375_v13  ;;  %p1562_p0 = scmp.lt.s32.totalorder %s1560_s11, %s1554_s15 }
 0x1ae   : > { %1263 = vmatprep.subr.bf16.mxu1 %v1636_v0 }
 0x1af   : > { %p1563_p2 = por %p1562_p0, %p1561_p13 }
 0x1b0   : > { %642 = vrot.lane.b32.xlu0 %v358_v7, %s1642_s27  ;;  %689 = vrot.lane.b32.xlu1 %v361_v10, %s1642_s27 }
 0x1b1   : > { %p1564_p10 = pnand %p1563_p2, %p1557_p9 }
 0x1b4   : > { %1254 = vmatmul.mubr.msk.bf16.vlgmr.msra.gmra.mxu1 %vm370_vm2, %v358_v7 }
 0x1b5   : > { %1265 = vmatprep.mubr.msk.bf16.mxu1 %vm1637_vm0, %v1636_v0 }
 0x21a   : > { %v419_v14 = vpop.permute.xlu0 %418 }
 0x21b   : > { %v424_v15 = vsel %vm370_vm2, %v419_v14, 0 }
 0x21c   : > { %1258 = vmatpush3.bf16.xpose.msra.mxu0 %v424_v15 }
 0x21d   : > { %1269 = vmatprep.subr.bf16.mxu0 %v1636_v0 }
 0x21e   : > { %v468_v16 = vpop.permute.xlu1 %467  ;;  %v517_v18 = vpop.permute.xlu0 %516 }
 0x21f   : > { %v473_v17 = vsel %vm370_vm2, %v468_v16, 0  ;;  %v522_v19 = vsel %vm370_vm2, %v517_v18, 0 }
 0x220   : > { %1264 = vmatpush3.bf16.xpose.msra.mxu1 %v473_v17 }
 0x221   : > { %1275 = vmatprep.subr.bf16.mxu1 %v1636_v0 }
 0x222   : > { %v643_v20 = vpop.permute.xlu0 %642  ;;  %v690_v21 = vpop.permute.xlu1 %689 }
 0x223   : > { %1260 = vmatmul.mubr.msk.bf16.vlgmr.msra.gmra.mxu0 %vm370_vm2, %v361_v10 }
 0x224   : > { %1270 = vmatpush3.bf16.xpose.msra.mxu0 %v522_v19  ;;  %1271 = vmatprep.mubr.msk.bf16.mxu0 %vm1637_vm0, %v1636_v0 }
 0x225   : > { %1281 = vmatprep.subr.bf16.mxu0 %v1636_v0 }
 0x227   : > { %1266 = vmatmul.mubr.msk.bf16.vlgmr.msra.gmra.mxu1 %vm370_vm2, %v1849_v12 }
 0x228   : > { %1276 = vmatpush3.bf16.msra.mxu1 %v643_v20  ;;  %1277 = vmatprep.mubr.msk.bf16.mxu1 %vm1637_vm0, %v1636_v0 }
 0x229   : > { %1287 = vmatprep.subr.bf16.mxu1 %v1636_v0 }
 0x22b   : > { %1272 = vmatmul.mubr.msk.bf16.vlgmr.msra.gmra.mxu0 %vm370_vm2, %v1847_v9 }
 0x22c   : > { %1282 = vmatpush3.bf16.msra.mxu0 %v690_v21  ;;  %1283 = vmatprep.mubr.msk.bf16.mxu0 %vm1637_vm0, %v1636_v0 }
 0x22d   : > { %1293 = vmatprep.subr.bf16.mxu0 %v1636_v0 }
 0x274   : > { %v411_v23 = vpop.f32.mrf.mxu1 }
 0x275   : > { %v412_v24 = vadd.f32 %v411_v23, %v366_v22 }
 0x276   : > { %v1255_v25 = vpop.f32.mrf.mxu1 }
 0x277   : > { %v566_v27 = vsel %vm565_vm3, %v412_v24, -inf }
 0x278   : > { %v414_v28 = vpop.f32.mrf.mxu1  ;;  %567 = vmax.xlane.f32.xlu1 %v566_v27 }
 0x279   : > { %v415_v29 = vadd.f32 %v414_v28, %v367_v26 }
 0x27a   : > { %v1256_v30 = vpop.f32.mrf.mxu1 }
 0x27b   : > { %v569_v31 = vsel %vm565_vm3, %v415_v29, -inf }
 0x27c   : > { %570 = vmax.xlane.f32.xlu0 %v569_v31 }
 0x2e3   : > { %v460_v32 = vpop.f32.mrf.mxu0 }
 0x2e4   : > { %v461_v33 = vadd.f32 %v460_v32, %v366_v22 }
 0x2e5   : > { %v1261_v34 = vpop.f32.mrf.mxu0 }
 0x2e6   : > { %v572_v35 = vsel %vm565_vm3, %v461_v33, -inf }
 0x2e7   : > { %v509_v36 = vpop.f32.mrf.mxu1  ;;  %573 = vmax.xlane.f32.xlu0 %v572_v35  ;;  %v463_v37 = vpop.f32.mrf.mxu0 }
 0x2e8   : > { %v510_v38 = vadd.f32 %v509_v36, %v366_v22  ;;  %v464_v39 = vadd.f32 %v463_v37, %v367_v26 }
 0x2e9   : > { %v1262_v40 = vpop.f32.mrf.mxu0  ;;  %v1267_v41 = vpop.f32.mrf.mxu1 }
 0x2ea   : > { %v578_v42 = vsel %vm565_vm3, %v510_v38, -inf  ;;  %v575_v43 = vsel %vm565_vm3, %v464_v39, -inf  ;;  %v852_v41 = vld [vmem:[#allocation7 + $0x4] sm:$0xf] }
 0x2eb   : > { %v512_v44 = vpop.f32.mrf.mxu1  ;;  %579 = vmax.xlane.f32.xlu0 %v578_v42  ;;  %576 = vmax.xlane.f32.xlu1 %v575_v43  ;;  %v558_v45 = vpop.f32.mrf.mxu0  ;;  %v858_v42 = vsel %vm856_vm4, %v852_v41, 0 }
 0x2ec   : > { %v513_v46 = vadd.f32 %v512_v44, %v367_v26  ;;  %v559_v47 = vadd.f32 %v558_v45, %v366_v22 }
 0x2ed   : > { %v1268_v48 = vpop.f32.mrf.mxu1  ;;  %v1273_v49 = vpop.f32.mrf.mxu0 }
 0x2ee   : > { %v581_v50 = vsel %vm565_vm3, %v513_v46, -inf  ;;  %v584_v51 = vsel %vm565_vm3, %v559_v47, -inf }
 0x2ef   : > { %582 = vmax.xlane.f32.xlu1 %v581_v50  ;;  %585 = vmax.xlane.f32.xlu0 %v584_v51  ;;  %v561_v52 = vpop.f32.mrf.mxu0 }
 0x2f0   : > { %v562_v53 = vadd.f32 %v561_v52, %v367_v26 }
 0x2f1   : > { %v1274_v54 = vpop.f32.mrf.mxu0 }
 0x2f2   : > { %v587_v55 = vsel %vm565_vm3, %v562_v53, -inf }
 0x2f3   : > { %588 = vmax.xlane.f32.xlu1 %v587_v55 }
 0x301   : > { %v568_v56 = vpop.xlane.xlu1 %567 }
 0x302   : > { %v590_v57 = vsub.f32 %v412_v24, %v568_v56 }
 0x304   : > { %736 = vrot.lane.b32.xlu1 %v1849_v12, %s1642_s27  ;;  %v598_v58 = vmul.f32 1.442695, %v590_v57 }
 0x305   : > { %v571_v59 = vpop.xlane.xlu0 %570  ;;  %783 = vrot.lane.b32.xlu0 %v1847_v9, %s1642_s27 }
 0x306   : > { %v591_v60 = vsub.f32 %v415_v29, %v571_v59  ;;  %1416 = vpow2.f32 %v598_v58 }
 0x308   : > { %v600_v61 = vmul.f32 1.442695, %v591_v60 }
 0x30a   : > { %1418 = vpow2.f32 %v600_v61 }
 0x313   : > { %v1417_v62 = vpop.eup %1416 }
 0x314   : > { %v614_v32 = vsel %vm565_vm3, %v1417_v62, 0.0 }
 0x317   : > { %v1419_v63 = vpop.eup %1418 }
 0x318   : > { %v638_v1 = vpack.c.bf16 %v1419_v63, %v1417_v62  ;;  %v617_v24 = vsel %vm565_vm3, %v1419_v63, 0.0 }
 0x31a   : > { %1278 = vmatmul.mubr.msk.bf16.vlgmr.msra.gmra.mxu1 %vm565_vm3, %v638_v1 }
 0x31b   : > { %1289 = vmatprep.mubr.msk.bf16.mxu1 %vm1637_vm0, %v1636_v0 }
 0x370   : > { %v574_v2 = vpop.xlane.xlu0 %573 }
 0x371   : > { %v592_v3 = vsub.f32 %v461_v33, %v574_v2 }
 0x373   : > { %v602_v4 = vmul.f32 1.442695, %v592_v3 }
 0x374   : > { %v580_v5 = vpop.xlane.xlu0 %579  ;;  %v577_v6 = vpop.xlane.xlu1 %576 }
 0x375   : > { %1420 = vpow2.f32 %v602_v4  ;;  %v594_v7 = vsub.f32 %v510_v38, %v580_v5  ;;  %v593_v8 = vsub.f32 %v464_v39, %v577_v6  ;;  %v850_v39 = vld [vmem:[#allocation7] sm:$0xf]  ;;  %v949_v5 = vld [vmem:[#allocation7 + $0x8] sm:$0xf] }
 0x376   : > { %v905_v40 = vsel %vm856_vm4, %v850_v39, 0  ;;  %v1208_v39 = vld [vmem:[%s1985_s3] ss:$0 sm:$0xff] }
 0x377   : > { %v604_v9 = vmul.f32 1.442695, %v593_v8  ;;  %v606_v10 = vmul.f32 1.442695, %v594_v7 }
 0x378   : > { %v583_v11 = vpop.xlane.xlu1 %582  ;;  %v586_v12 = vpop.xlane.xlu0 %585 }
 0x379   : > { %v595_v13 = vsub.f32 %v513_v46, %v583_v11  ;;  %v596_v14 = vsub.f32 %v559_v47, %v586_v12  ;;  %1422 = vpow2.f32 %v604_v9  ;;  %v954_v12 = vsel %vm856_vm4, %v949_v5, 0 }
 0x37a   : > { %1424 = vpow2.f32 %v606_v10 }
 0x37b   : > { %v608_v15 = vmul.f32 1.442695, %v595_v13  ;;  %v610_v16 = vmul.f32 1.442695, %v596_v14 }
 0x37c   : > { %v589_v17 = vpop.xlane.xlu1 %588  ;;  %v784_v29 = vpop.permute.xlu0 %783 }
 0x37d   : > { %1426 = vpow2.f32 %v608_v15  ;;  %v597_v18 = vsub.f32 %v562_v53, %v589_v17  ;;  %v1000_v53 = vld [vmem:[#allocation7 + $0xc] sm:$0xf] }
 0x37e   : > { %1428 = vpow2.f32 %v610_v16  ;;  %v1005_v57 = vsel %vm856_vm4, %v1000_v53, 0 }
 0x37f   : > { %v612_v19 = vmul.f32 1.442695, %v597_v18 }
 0x380   : > { %v737_v20 = vpop.permute.xlu1 %736 }
 0x381   : > { %1430 = vpow2.f32 %v612_v19  ;;  %1288 = vmatpush3.bf16.msra.mxu1 %v737_v20 }
 0x382   : > { %v1421_v21 = vpop.eup %1420  ;;  %1299 = vmatprep.subr.bf16.mxu1 %v1636_v0 }
 0x383   : > { %v620_v22 = vsel %vm565_vm3, %v1421_v21, 0.0 }
 0x384   : > { %621 = vadd.xlane.f32.xlu1 %v620_v22 }
 0x386   : > { %v1423_v23 = vpop.eup %1422 }
 0x387   : > { %v623_v25 = vsel %vm565_vm3, %v1423_v23, 0.0  ;;  %v639_v26 = vpack.c.bf16 %v1423_v23, %v1421_v21  ;;  %v1425_v27 = vpop.eup %1424 }
 0x388   : > { %618 = vadd.xlane.f32.xlu1 %v617_v24  ;;  %624 = vadd.xlane.f32.xlu0 %v623_v25  ;;  %v626_v37 = vsel %vm565_vm3, %v1425_v27, 0.0 }
 0x389   : > { %1284 = vmatmul.mubr.msk.bf16.vlgmr.msra.gmra.mxu0 %vm565_vm3, %v639_v26 }
 0x38a   : > { %v1427_v28 = vpop.eup %1426  ;;  %1294 = vmatpush3.bf16.msra.mxu0 %v784_v29  ;;  %1295 = vmatprep.mubr.msk.bf16.mxu0 %vm1637_vm0, %v1636_v0 }
 0x38b   : > { %v629_v30 = vsel %vm565_vm3, %v1427_v28, 0.0  ;;  %v640_v31 = vpack.c.bf16 %v1427_v28, %v1425_v27  ;;  %1305 = vmatprep.subr.bf16.mxu0 %v1636_v0  ;;  %v1429_v33 = vpop.eup %1428 }
 0x38c   : > { %630 = vadd.xlane.f32.xlu1 %v629_v30  ;;  %615 = vadd.xlane.f32.xlu0 %v614_v32  ;;  %v632_v38 = vsel %vm565_vm3, %v1429_v33, 0.0 }
 0x38d   : > { %1290 = vmatmul.mubr.msk.bf16.vlgmr.msra.gmra.mxu1 %vm565_vm3, %v640_v31 }
 0x38e   : > { %v1431_v34 = vpop.eup %1430  ;;  %1301 = vmatprep.mubr.msk.bf16.mxu1 %vm1637_vm0, %v1636_v0  ;;  %1300 = vmatpush3.bf16.msra.mxu1 %v858_v42 }
 0x38f   : > { %v635_v35 = vsel %vm565_vm3, %v1431_v34, 0.0  ;;  %v641_v36 = vpack.c.bf16 %v1431_v34, %v1429_v33  ;;  %1311 = vmatprep.subr.bf16.mxu1 %v1636_v0 }
 0x390   : > { %636 = vadd.xlane.f32.xlu1 %v635_v35  ;;  %627 = vadd.xlane.f32.xlu0 %v626_v37 }
 0x391   : > { %1296 = vmatmul.mubr.msk.bf16.vlgmr.msra.gmra.mxu0 %vm565_vm3, %v641_v36 }
 0x392   : > { %1307 = vmatprep.mubr.msk.bf16.mxu0 %vm1637_vm0, %v1636_v0  ;;  %1306 = vmatpush3.bf16.msra.mxu0 %v905_v40 }
 0x393   : > { %1317 = vmatprep.subr.bf16.mxu0 %v1636_v0 }
 0x394   : > { %633 = vadd.xlane.f32.xlu0 %v632_v38 }
 0x3da   : > { %v682_v43 = vpop.f32.mrf.mxu1 }
 0x3dc   : > { %v1279_v44 = vpop.f32.mrf.mxu1 }
 0x3de   : > { %v685_v45 = vpop.f32.mrf.mxu1 }
 0x3e0   : > { %v1280_v46 = vpop.f32.mrf.mxu1 }
 0x40d   : > { %v622_v47 = vpop.xlane.xlu1 %621 }
 0x411   : > { %v625_v48 = vpop.xlane.xlu0 %624  ;;  %v619_v49 = vpop.xlane.xlu1 %618 }
 0x412   : > { %1432 = vrcp.f32 %v619_v49 }
 0x415   : > { %v616_v50 = vpop.xlane.xlu0 %615  ;;  %v631_v58 = vpop.xlane.xlu1 %630 }
 0x416   : > { %1434 = vrcp.f32 %v616_v50 }
 0x417   : > { %1436 = vrcp.f32 %v622_v47 }
 0x418   : > { %1438 = vrcp.f32 %v625_v48 }
 0x419   : > { %v628_v59 = vpop.xlane.xlu0 %627  ;;  %v637_v60 = vpop.xlane.xlu1 %636  ;;  %1440 = vrcp.f32 %v631_v58 }
 0x41a   : > { %1442 = vrcp.f32 %v637_v60 }
 0x41b   : > { %1444 = vrcp.f32 %v628_v59 }
 0x41d   : > { %v634_v61 = vpop.xlane.xlu0 %633 }
 0x41e   : > { %1446 = vrcp.f32 %v634_v61 }
 0x41f   : > { %v1433_v51 = vpop.eup %1432 }
 0x420   : > { %v839_v55 = vmul.f32 %v1433_v51, %v685_v45 }
 0x423   : > { %v1435_v52 = vpop.eup %1434 }
 0x424   : > { %v838_v54 = vmul.f32 %v1435_v52, %v682_v43  ;;  %v1437_v1 = vpop.eup %1436 }
 0x425   : > { %v1439_v3 = vpop.eup %1438 }
 0x426   : > { %v846_v56 = vpack.c.bf16 %v839_v55, %v838_v54  ;;  %v1441_v14 = vpop.eup %1440 }
 0x427   : > { %v1443_v16 = vpop.eup %1442 }
 0x428   : > { %1308 = vmatmul.mubr.msk.bf16.vlgmr.msra.gmra.mxu0 %vm370_vm2, %v846_v56  ;;  %v1445_v18 = vpop.eup %1444 }
 0x429   : > { %1318 = vmatpush3.bf16.msra.mxu0 %v1005_v57  ;;  %1319 = vmatprep.mubr.msk.bf16.mxu0 %vm1637_vm0, %v1636_v0 }
 0x42b   : > { %v1447_v20 = vpop.eup %1446 }
 0x449   : > { %v729_v62 = vpop.f32.mrf.mxu0 }
 0x44a   : > { %v840_v6 = vmul.f32 %v1437_v1, %v729_v62 }
 0x44b   : > { %v1285_v63 = vpop.f32.mrf.mxu0 }
 0x44d   : > { %v776_v2 = vpop.f32.mrf.mxu1  ;;  %v732_v4 = vpop.f32.mrf.mxu0 }
 0x44e   : > { %v841_v7 = vmul.f32 %v1439_v3, %v732_v4  ;;  %v842_v22 = vmul.f32 %v1445_v18, %v776_v2 }
 0x44f   : > { %v1291_v8 = vpop.f32.mrf.mxu1  ;;  %v1286_v9 = vpop.f32.mrf.mxu0 }
 0x450   : > { %v847_v10 = vpack.c.bf16 %v841_v7, %v840_v6 }
 0x451   : > { %v779_v11 = vpop.f32.mrf.mxu1  ;;  %v823_v13 = vpop.f32.mrf.mxu0 }
 0x452   : > { %1302 = vmatmul.mubr.msk.bf16.vlgmr.msra.gmra.mxu1 %vm370_vm2, %v847_v10  ;;  %v843_v19 = vmul.f32 %v1441_v14, %v779_v11  ;;  %v844_v23 = vmul.f32 %v1447_v20, %v823_v13 }
 0x453   : > { %v1292_v15 = vpop.f32.mrf.mxu1  ;;  %v1297_v17 = vpop.f32.mrf.mxu0  ;;  %1312 = vmatpush3.bf16.msra.mxu1 %v954_v12  ;;  %1313 = vmatprep.mubr.msk.bf16.mxu1 %vm1637_vm0, %v1636_v0 }
 0x454   : > { %v848_v26 = vpack.c.bf16 %v843_v19, %v842_v22 }
 0x455   : > { %v826_v21 = vpop.f32.mrf.mxu0 }
 0x456   : > { %v845_v24 = vmul.f32 %v1443_v16, %v826_v21 }
 0x457   : > { %v1298_v25 = vpop.f32.mrf.mxu0 }
 0x458   : > { %v849_v27 = vpack.c.bf16 %v845_v24, %v844_v23 }
 0x45a   : > { %1314 = vmatmul.mubr.msk.bf16.vlgmr.msra.gmra.mxu1 %vm370_vm2, %v848_v26  ;;  %1320 = vmatmul.mubr.msk.bf16.vlgmr.msra.gmra.mxu0 %vm370_vm2, %v849_v27 }
 0x4e8   : > { %v941_v28 = vpop.f32.mrf.mxu0 }
 0x4ea   : > { %v1309_v29 = vpop.f32.mrf.mxu0 }
 0x4ec   : > { %v944_v30 = vpop.f32.mrf.mxu0 }
 0x4ee   : > { %v1310_v31 = vpop.f32.mrf.mxu0 }
 0x512   : > { %v894_v0 = vpop.f32.mrf.mxu1 }
 0x513   : > { %v942_v35 = vadd.f32 %v941_v28, %v894_v0 }
 0x514   : > { %v1303_v32 = vpop.f32.mrf.mxu1 }
 0x516   : > { %v897_v33 = vpop.f32.mrf.mxu1 }
 0x517   : > { %v945_v42 = vadd.f32 %v944_v30, %v897_v33 }
 0x518   : > { %v1304_v34 = vpop.f32.mrf.mxu1 }
 0x51a   : > { %v990_v36 = vpop.f32.mrf.mxu1  ;;  %v1041_v37 = vpop.f32.mrf.mxu0 }
 0x51b   : > { %v997_v38 = vadd.f32 %v990_v36, %v942_v35 }
 0x51c   : > { %v1315_v40 = vpop.f32.mrf.mxu1  ;;  %v1321_v41 = vpop.f32.mrf.mxu0 }
 0x51d   : > { %v1048_v43 = vadd.f32 %v1041_v37, %v997_v38 }
 0x51e   : > { %v993_v44 = vpop.f32.mrf.mxu1  ;;  %v1044_v45 = vpop.f32.mrf.mxu0 }
 0x51f   : > { %v1057_v46 = vadd.f32 %v1208_v39, %v1048_v43  ;;  %v998_v47 = vadd.f32 %v993_v44, %v945_v42 }
 0x520   : > { %v1316_v48 = vpop.f32.mrf.mxu1  ;;  %v1322_v49 = vpop.f32.mrf.mxu0 }
 0x521   : > { %1059 = vst.msk [vmem:[%s286_s23] sm:$0xff] %vm313_vm1, %v1057_v46  ;;  %v1049_v50 = vadd.f32 %v1044_v45, %v998_v47 }
 0x523   : > { %v1058_v51 = vadd.f32 %v1208_v39, %v1049_v50 }
 0x525   : > { %1060 = vst.msk [vmem:[%s286_s23 + $0x8] sm:$0xff] %vm313_vm1, %v1058_v51 }
 0x526   : > { %1567 = shalt.err (!%p1564_p10)
}
 0x527   : > { %s1568_s17 = scalar_lea.hbm %s1936_s8, 256  ;;  %s1572_s30 = scalar_lea.hbm %s1987_s5, 512 }
 0x528   : > { %p1569_p6 = scmp.ne.s32.totalorder %s1936_s8, %s1568_s17  ;;  %p1573_p3 = scmp.lt.s32.totalorder %s1936_s8, %s1987_s5 }
 0x529   : > { %p1574_p11 = scmp.lt.s32.totalorder %s1572_s30, %s1568_s17 }
 0x52a   : > { %p1570_p4 = pnand %p1569_p6, %p2006_p1 }
 0x52b   : > { %p1575_p5 = por %p1574_p11, %p1573_p3 }
 0x52c   : > { %p1571_p8 = pneg %p1570_p4 }
 0x52e   : > { %p1576_p7 = pnand %p1575_p5, %p1571_p8 }
 0x530   : > { %1579 = shalt.err (!%p1576_p7)
}
 0x531   : > { %s1644_s23 = smov 128   ;;  %s1645_s7 = smov 8  }
 0x532   : > { %1337 = dma.vmem_to_hbm [thread:$0]  (%p2006_p1), %s1938_s9, 256, %s1936_s8, %s1062_s22, %s1644_s23, %s1644_s23, %s1645_s7  }
 0x533 PF: > { %s1090_s10 = sand.u32 1, %s1614_s18   ;;  %p2007_p12 = scmp.ne.s32.totalorder %s1994_s25, 0 }
 0x534   : > { %p2008_p9 = scmp.ge.s32.totalorder %s1626_s21, 2  ;;  %s1091_s15 = scalar_lea.sflag [#allocation4], %s1090_s10 }
 0x536   : > { %p1354_p13 = pnand %p2008_p9, %p2007_p12 }
 0x538   : > { %p1355_p0 = pneg %p1354_p13 }
 0x53a   : > { %1609 = dma.done.wait (%p1355_p0), %s1091_s15, 256  }
 0x53b   : > { %1611 = vsyncadd (%p1355_p0), %s1091_s15, 4294967040  ;;  %p20_p2 = scmp.ge.s32.totalorder %s1762_s6, 4   ;;  %s2009_s18 = smov %s1618_s19 }
 0x53c   : > { %s2010_s19 = smov %s1622_s20  ;;  %s2011_s20 = smov %s1772_s12 }
 0x53d   : > { %s2012_s21 = smov %s1762_s6  ;;  %22 = sbr.rel (!%p20_p2) target bundleno = 7 (0x7), region = 100 }
 0x542   :  { %1096 = vsyncpa [#allocation3], 1 }
 0x543   :  { %1098 = vsyncpa [#allocation3 + $0x1], 1 }
 0x544   :  { %1099 = vsyncpa [#allocation6], 1 }
 0x545   :  { %1100 = vsyncpa [#allocation9], 1 }
 0x546   :  { %1101 = vsyncpa [#allocation4], 1 }
 0x547   :  { %1103 = vsyncpa [#allocation4 + $0x1], 1 }

</bundles_post_ra>
